<compile_context>
chip_gen: v5e
topology: v5e:2x2
jax: 0.10.0
libtpu: 0.0.40
codegen_flags: <defaults>
</compile_context>

<pallas_src>
import functools

import numpy as np
import jax
import jax.numpy as jnp
from jax.experimental import pallas as pl
from jax.experimental.pallas import tpu as pltpu


def _round_up(x, m):
    return (x + m - 1) // m * m


def _pick_block_rows(l_pad, sub, cap):
    """Largest multiple of `sub` that divides l_pad and is <= cap (so no tail slice)."""
    best = sub
    t = sub
    limit = min(cap, l_pad)
    while t <= limit:
        if l_pad % t == 0:
            best = t
        t += sub
    return best


def _gather_block_kernel(ids_ref, table_ref, out_ref, *, tq, rows_per_group):
    """Gather tq rows from the VMEM-resident table in sublane-aligned groups.

    ids_ref:   (l_pad,) int32 in SMEM (scalar prefetch) -- all position ids.
    table_ref: (max_pos, H) VMEM -- whole embedding table (same block every grid step).
    out_ref:   (tq, H) VMEM -- dense output tile for this grid step.
    """
    max_pos = table_ref.shape[0]
    base = pl.program_id(0) * tq
    n_groups = tq // rows_per_group

    @pl.loop(0, n_groups)
    def _(g):
        off = pl.multiple_of(g * rows_per_group, rows_per_group)
        rows = []
        # Unrolled group body: scheduler sees all scalar id reads + row loads at once.
        for r in range(rows_per_group):
            idx = ids_ref[base + off + r]
            # In-kernel OOB guard (VMEM reads are unchecked); scalar-unit min/max.
            idx = jnp.minimum(jnp.maximum(idx, 0), max_pos - 1)
            rows.append(table_ref[pl.ds(idx, 1), :])
        # One unmasked, sublane-aligned (rows_per_group, H) store per group.
        out_ref[pl.ds(off, rows_per_group), :] = jnp.concatenate(rows, axis=0)


def positional_embedding_forward(position_ids, table, *, contiguous_ids=None,
                                 block_rows=256):
    """position_ids: [1, L] int; table: [max_pos, H] -> [L, 1, H].

    contiguous_ids:
      True  -- caller guarantees position_ids == arange(L) (standard BERT): pure slice,
               no Pallas launch.  Pass this (statically) under jit to hit the fast path.
      False -- always run the gather kernel.
      None  -- auto-detect only when ids are concrete (eager); tracers fall through to
               the gather kernel.
    """
    assert position_ids.ndim == 2 and position_ids.shape[0] == 1
    L = position_ids.shape[1]
    max_pos, H = table.shape

    # ---- Contiguous-arange fast path: plain slice, fusable by XLA downstream. ----
    use_fast = contiguous_ids is True
    if contiguous_ids is None:
        try:
            ids_np = np.asarray(position_ids).reshape(-1)
            use_fast = (L <= max_pos) and np.array_equal(
                ids_np, np.arange(L, dtype=ids_np.dtype))
        except Exception:  # tracer under jit -> cannot auto-detect
            use_fast = False
    if use_fast:
        assert L <= max_pos, "contiguous fast path requires L <= max_position_embeddings"
        return table[:L][:, None, :]

    # ---- General gather path: whole table resident in VMEM, ids in SMEM. ----
    ids = position_ids[0].astype(jnp.int32)

    itemsize = jnp.dtype(table.dtype).itemsize
    sub = max(8, 32 // itemsize)          # sublane group: 8 f32 / 16 bf16 / 32 int8
    l_pad = _round_up(L, sub)
    tq = _pick_block_rows(l_pad, sub, block_rows)   # divides l_pad -> no tail block
    n_blocks = l_pad // tq

    if l_pad != L:
        ids = jnp.pad(ids, (0, l_pad - L))  # pad with id 0 (valid row), sliced off below

    # Megacore: only worth sharding when the grid has enough steps; otherwise keep the
    # single-core path and avoid duplicating the resident-table DMA on v7x's 2 TCs.
    dim_sem = ("parallel",) if n_blocks >= 4 else ("arbitrary",)

    # Raise the scoped VMEM limit if the resident table (double-buffered by default) plus
    # output blocks would overflow the default limit (large-H reuse; no-op at BERT sizes).
    table_bytes = max_pos * H * itemsize
    out_block_bytes = tq * H * itemsize
    vmem_needed = 2 * table_bytes + 2 * out_block_bytes + (1 << 20)
    vmem_limit = min(vmem_needed, 128 << 20) if vmem_needed > (32 << 20) else None

    gathered = pl.pallas_call(
        functools.partial(_gather_block_kernel, tq=tq, rows_per_group=sub),
        out_shape=jax.ShapeDtypeStruct((l_pad, H), table.dtype),
        grid_spec=pltpu.PrefetchScalarGridSpec(
            num_scalar_prefetch=1,            # ids -> SMEM, read inside the kernel
            grid=(n_blocks,),
            in_specs=[
                # Whole table as one block, same block index every grid step
                # -> DMA'd HBM->VMEM once, reused across the grid.
                pl.BlockSpec((max_pos, H), lambda i, ids_ref: (0, 0)),
            ],
            out_specs=pl.BlockSpec((tq, H), lambda i, ids_ref: (i, 0)),
        ),
        compiler_params=pltpu.CompilerParams(
            dimension_semantics=dim_sem,
            vmem_limit_bytes=vmem_limit,
        ),
    )(ids, table)

    if l_pad != L:
        gathered = gathered[:L]
    # [1, L, H].transpose(0, 1) == [L, 1, H]
    return gathered.reshape(L, 1, H)


def make_params(key, hidden_size, max_position_embeddings=512,
                initializer_range=0.02):
    # Mirrors normal_(p, mean=0.0, std=initializer_range)
    return initializer_range * jax.random.normal(
        key, (max_position_embeddings, hidden_size), dtype=jnp.float32)


if __name__ == "__main__":
    hidden_size = 128
    max_position_embeddings = 512
    seq_len = 16

    key = jax.random.PRNGKey(0)
    k_table, k_ids = jax.random.split(key)
    table = make_params(k_table, hidden_size, max_position_embeddings)

    def ref_fwd(pids):
        return jnp.take(table, pids[0], axis=0)[:, None, :]

    # Case 1: standard BERT arange ids, auto-detected fast path (pure slice).
    pids = jnp.arange(seq_len, dtype=jnp.int32)[None, :]
    out = jax.block_until_ready(positional_embedding_forward(pids, table))
    assert out.shape == (seq_len, 1, hidden_size), out.shape
    assert jnp.allclose(out, ref_fwd(pids)), "mismatch (fast path)"

    # Case 2: same arange ids, forced through the Pallas gather kernel.
    out = jax.block_until_ready(
        positional_embedding_forward(pids, table, contiguous_ids=False))
    assert jnp.allclose(out, ref_fwd(pids)), "mismatch (gather path, arange ids)"

    # Case 3: arbitrary ids through the jitted gather kernel (production general case).
    rand_ids = jax.random.randint(
        k_ids, (1, seq_len), 0, max_position_embeddings, dtype=jnp.int32)
    fwd_jit = jax.jit(functools.partial(positional_embedding_forward,
                                        contiguous_ids=False))
    out = jax.block_until_ready(fwd_jit(rand_ids, table))
    assert jnp.allclose(out, ref_fwd(rand_ids)), "mismatch (jitted gather path)"

    # Case 4: odd sequence length (exercises sublane padding + tail slice).
    odd_ids = jax.random.randint(
        jax.random.PRNGKey(1), (1, 11), 0, max_position_embeddings, dtype=jnp.int32)
    out = jax.block_until_ready(positional_embedding_forward(odd_ids, table))
    assert out.shape == (11, 1, hidden_size), out.shape
    assert jnp.allclose(out, ref_fwd(odd_ids)), "mismatch (odd-L gather path)"

    # Case 5: jitted fast path via the static flag (what production BERT should use).
    fast_jit = jax.jit(functools.partial(positional_embedding_forward,
                                         contiguous_ids=True))
    out = jax.block_until_ready(fast_jit(pids, table))
    assert jnp.allclose(out, ref_fwd(pids)), "mismatch (jitted fast path)"

    print("KERNEL_OK")
</pallas_src>

<mosaic_0001>
module attributes {stable_mosaic.version = 11 : i64} {
  func.func @_gather_block_kernel(%arg0: i32, %arg1: memref<16xi32, #tpu.memory_space<smem>>, %arg2: memref<512x128xf32, #tpu.memory_space<vmem>>, %arg3: memref<16x128xf32, #tpu.memory_space<vmem>>) attributes {dimension_semantics = [#tpu.dimension_semantics<arbitrary>], iteration_bounds = array<i64: 1>, scalar_prefetch = 1 : i64, scratch_operands = 0 : i64, tpu.core_type = #tpu.core_type<tc>, window_params = [{pipeline_mode = #tpu.pipeline_mode<synchronous>, transform_indices = @transform_0, window_bounds = array<i64: 512, 128>}, {transform_indices = @transform_1, window_bounds = array<i64: 16, 128>}]} {
    %c16_i32 = arith.constant 16 : i32
    %0 = arith.muli %arg0, %c16_i32 : i32
    %c0_i32 = arith.constant 0 : i32
    %c2_i32 = arith.constant 2 : i32
    %1 = arith.addi %c0_i32, %c2_i32 : i32
    %c1_i32 = arith.constant 1 : i32
    scf.for %arg4 = %c0_i32 to %1 step %c1_i32  : i32 {
      %c1_i32_1 = arith.constant 1 : i32
      %2 = arith.muli %arg4, %c1_i32_1 : i32
      %c0_i32_2 = arith.constant 0 : i32
      %3 = arith.addi %c0_i32_2, %2 : i32
      %c8_i32 = arith.constant 8 : i32
      %4 = arith.muli %3, %c8_i32 : i32
      %5 = tpu.assume_multiple %4, 8 : i32
      %6 = arith.addi %0, %5 : i32
      %c0_i32_3 = arith.constant 0 : i32
      %7 = arith.addi %6, %c0_i32_3 : i32
      %8 = arith.index_cast %7 : i32 to index
      %9 = memref.load %arg1[%8] : memref<16xi32, #tpu.memory_space<smem>>
      %c0_i32_4 = arith.constant 0 : i32
      %10 = arith.maxsi %9, %c0_i32_4 : i32
      %c511_i32 = arith.constant 511 : i32
      %11 = arith.minsi %10, %c511_i32 : i32
      %12 = arith.index_cast %11 : i32 to index
      %c0 = arith.constant 0 : index
      %13 = vector.load %arg2[%12, %c0] : memref<512x128xf32, #tpu.memory_space<vmem>>, vector<1x128xf32>
      %14 = arith.addi %0, %5 : i32
      %c1_i32_5 = arith.constant 1 : i32
      %15 = arith.addi %14, %c1_i32_5 : i32
      %16 = arith.index_cast %15 : i32 to index
      %17 = memref.load %arg1[%16] : memref<16xi32, #tpu.memory_space<smem>>
      %c0_i32_6 = arith.constant 0 : i32
      %18 = arith.maxsi %17, %c0_i32_6 : i32
      %c511_i32_7 = arith.constant 511 : i32
      %19 = arith.minsi %18, %c511_i32_7 : i32
      %20 = arith.index_cast %19 : i32 to index
      %c0_8 = arith.constant 0 : index
      %21 = vector.load %arg2[%20, %c0_8] : memref<512x128xf32, #tpu.memory_space<vmem>>, vector<1x128xf32>
      %22 = arith.addi %0, %5 : i32
      %c2_i32_9 = arith.constant 2 : i32
      %23 = arith.addi %22, %c2_i32_9 : i32
      %24 = arith.index_cast %23 : i32 to index
      %25 = memref.load %arg1[%24] : memref<16xi32, #tpu.memory_space<smem>>
      %c0_i32_10 = arith.constant 0 : i32
      %26 = arith.maxsi %25, %c0_i32_10 : i32
      %c511_i32_11 = arith.constant 511 : i32
      %27 = arith.minsi %26, %c511_i32_11 : i32
      %28 = arith.index_cast %27 : i32 to index
      %c0_12 = arith.constant 0 : index
      %29 = vector.load %arg2[%28, %c0_12] : memref<512x128xf32, #tpu.memory_space<vmem>>, vector<1x128xf32>
      %30 = arith.addi %0, %5 : i32
      %c3_i32 = arith.constant 3 : i32
      %31 = arith.addi %30, %c3_i32 : i32
      %32 = arith.index_cast %31 : i32 to index
      %33 = memref.load %arg1[%32] : memref<16xi32, #tpu.memory_space<smem>>
      %c0_i32_13 = arith.constant 0 : i32
      %34 = arith.maxsi %33, %c0_i32_13 : i32
      %c511_i32_14 = arith.constant 511 : i32
      %35 = arith.minsi %34, %c511_i32_14 : i32
      %36 = arith.index_cast %35 : i32 to index
      %c0_15 = arith.constant 0 : index
      %37 = vector.load %arg2[%36, %c0_15] : memref<512x128xf32, #tpu.memory_space<vmem>>, vector<1x128xf32>
      %38 = arith.addi %0, %5 : i32
      %c4_i32 = arith.constant 4 : i32
      %39 = arith.addi %38, %c4_i32 : i32
      %40 = arith.index_cast %39 : i32 to index
      %41 = memref.load %arg1[%40] : memref<16xi32, #tpu.memory_space<smem>>
      %c0_i32_16 = arith.constant 0 : i32
      %42 = arith.maxsi %41, %c0_i32_16 : i32
      %c511_i32_17 = arith.constant 511 : i32
      %43 = arith.minsi %42, %c511_i32_17 : i32
      %44 = arith.index_cast %43 : i32 to index
      %c0_18 = arith.constant 0 : index
      %45 = vector.load %arg2[%44, %c0_18] : memref<512x128xf32, #tpu.memory_space<vmem>>, vector<1x128xf32>
      %46 = arith.addi %0, %5 : i32
      %c5_i32 = arith.constant 5 : i32
      %47 = arith.addi %46, %c5_i32 : i32
      %48 = arith.index_cast %47 : i32 to index
      %49 = memref.load %arg1[%48] : memref<16xi32, #tpu.memory_space<smem>>
      %c0_i32_19 = arith.constant 0 : i32
      %50 = arith.maxsi %49, %c0_i32_19 : i32
      %c511_i32_20 = arith.constant 511 : i32
      %51 = arith.minsi %50, %c511_i32_20 : i32
      %52 = arith.index_cast %51 : i32 to index
      %c0_21 = arith.constant 0 : index
      %53 = vector.load %arg2[%52, %c0_21] : memref<512x128xf32, #tpu.memory_space<vmem>>, vector<1x128xf32>
      %54 = arith.addi %0, %5 : i32
      %c6_i32 = arith.constant 6 : i32
      %55 = arith.addi %54, %c6_i32 : i32
      %56 = arith.index_cast %55 : i32 to index
      %57 = memref.load %arg1[%56] : memref<16xi32, #tpu.memory_space<smem>>
      %c0_i32_22 = arith.constant 0 : i32
      %58 = arith.maxsi %57, %c0_i32_22 : i32
      %c511_i32_23 = arith.constant 511 : i32
      %59 = arith.minsi %58, %c511_i32_23 : i32
      %60 = arith.index_cast %59 : i32 to index
      %c0_24 = arith.constant 0 : index
      %61 = vector.load %arg2[%60, %c0_24] : memref<512x128xf32, #tpu.memory_space<vmem>>, vector<1x128xf32>
      %62 = arith.addi %0, %5 : i32
      %c7_i32 = arith.constant 7 : i32
      %63 = arith.addi %62, %c7_i32 : i32
      %64 = arith.index_cast %63 : i32 to index
      %65 = memref.load %arg1[%64] : memref<16xi32, #tpu.memory_space<smem>>
      %c0_i32_25 = arith.constant 0 : i32
      %66 = arith.maxsi %65, %c0_i32_25 : i32
      %c511_i32_26 = arith.constant 511 : i32
      %67 = arith.minsi %66, %c511_i32_26 : i32
      %68 = arith.index_cast %67 : i32 to index
      %c0_27 = arith.constant 0 : index
      %69 = vector.load %arg2[%68, %c0_27] : memref<512x128xf32, #tpu.memory_space<vmem>>, vector<1x128xf32>
      %70 = tpu.concatenate %13, %21, %29, %37, %45, %53, %61, %69 in 0 : vector<1x128xf32>, vector<1x128xf32>, vector<1x128xf32>, vector<1x128xf32>, vector<1x128xf32>, vector<1x128xf32>, vector<1x128xf32>, vector<1x128xf32> -> vector<8x128xf32>
      %71 = arith.index_cast %5 : i32 to index
      %c0_28 = arith.constant 0 : index
      %72 = vector.load %arg3[%71, %c0_28] : memref<16x128xf32, #tpu.memory_space<vmem>>, vector<8x128xf32>
      tpu.vector_store %arg3[%71, %c0_28], %70 {strides = array<i32>} : memref<16x128xf32, #tpu.memory_space<vmem>>, vector<8x128xf32>,
    }
    %c2_i32_0 = arith.constant 2 : i32
    return
  }
  func.func @transform_0(%arg0: i32, %arg1: memref<16xi32, #tpu.memory_space<smem>>) -> (i32, i32) {
    %c0_i32 = arith.constant 0 : i32
    %c0_i32_0 = arith.constant 0 : i32
    %c0_i32_1 = arith.constant 0 : i32
    return %c0_i32, %c0_i32_0 : i32, i32
  }
  func.func @transform_1(%arg0: i32, %arg1: memref<16xi32, #tpu.memory_space<smem>>) -> (i32, i32) {
    %c0_i32 = arith.constant 0 : i32
    %c0_i32_0 = arith.constant 0 : i32
    return %arg0, %c0_i32 : i32, i32
  }
}

</mosaic_0001>

<bundles_post_ra>
// kernel: tpu_custom_call.1
= control target key start
LH: loop header
LB: loop body
LE: loop exit
PB: predicated region body
PF: predicated region fallthrough
CT: control target
= control target key end

     0   :  { %s321_s12 = smov [#allocation3]   ;;  %s388_s0 = inlined_call_operand.hbm [shape: s32[16], index: 0, kind: input, shape index: {}]   ;;  %s389_s1 = inlined_call_operand.hbm [shape: f32[512,128], index: 1, kind: input, shape index: {}]   ;;  %s390_s2 = inlined_call_operand.hbm [shape: f32[16,128], index: 2, kind: output, shape index: {}]  }
   0x1   :  { %s8_s11 = sshll.u32 %s388_s0, 4  ;;  %s9_s11 = int_to_ptr.hbm [resolvable:$true] %s8_s11 }
   0x2   :  { %11 = dma.hbm_to_smem %s9_s11, 16, %s321_s12, [#allocation2] }
   0x3   :  { %311 = dma.done.wait [#allocation2], 16 }
   0x4   :  { %312 = vsyncadd [#allocation2], 4294967280 }
   0x5   :  { %14 = sfence }
   0x6   :  { %15 = vsyncpa [#allocation5], 0 }
   0x7   :  { %16 = vsyncpa [#allocation6], 0  ;;  %s21_s15 = sshll.u32 %s389_s1, 4  ;;  %s322_s16 = smov [#allocation4]   ;;  %s22_s15 = int_to_ptr.hbm [resolvable:$true] %s21_s15 }
   0x8   :  { %s23_s17 = sshll.u32 %s322_s16, 4  ;;  %s323_s18 = smov 128   ;;  %s24_s17 = int_to_ptr.vmem [resolvable:$true] %s23_s17 }
   0x9   :  { %s324_s19 = smov 8  }
   0xa   :  { %29 = dma.hbm_to_vmem [thread:$0]  %s22_s15, 8192, %s24_s17, [#allocation5], %s323_s18, %s323_s18, %s324_s19  }
   0xb   :  { %313 = dma.done.wait [#allocation5], 8192  }
   0xc   :  { %314 = vsyncadd [#allocation5], 4294959104  ;;  %s350_s0 = smov 0  }
   0xd LB: > { %s356_s1 = sshll.u32 %s319_s0, 3  ;;  %vm127_vm0 = vcmask 1040384   ;;  %vm129_vm1 = vcmask 1041408   ;;  %vm131_vm2 = vcmask 1042432   ;;  %vm133_vm3 = vcmask 1043456   ;;  %s40_s0 = sadd.s32 1, %s319_s0   ;;  %s319_s0 = sphi %s350_s0, %s40_s0  }
   0xe   : > { %s43_s20 = sld [smem:[#allocation3 + %s356_s1]]  ;;  %s50_s21 = sadd.s32 1, %s356_s1  ;;  %vm135_vm4 = vcmask 1044480   ;;  %vm137_vm5 = vcmask 1045504   ;;  %vm139_vm6 = vcmask 1046528  }
   0xf   : > { %s51_s22 = sld [smem:[#allocation3 + %s50_s21]]  ;;  %s58_s23 = sadd.s32 2, %s356_s1 }
  0x10   : > { %s59_s24 = sld [smem:[#allocation3 + %s58_s23]]  ;;  %s66_s25 = sadd.s32 3, %s356_s1 }
  0x11   : > { %s67_s26 = sld [smem:[#allocation3 + %s66_s25]]  ;;  %s74_s27 = sadd.s32 4, %s356_s1 }
  0x12   : > { %s363_s28 = sld [smem:[#allocation3 + %s74_s27]]  ;;  %s82_s29 = sadd.s32 5, %s356_s1 }
  0x13   : > { %s366_s30 = sld [smem:[#allocation3 + %s82_s29]]  ;;  %s90_s3 = sadd.s32 6, %s356_s1 }
  0x14   : > { %p44_p0 = scmp.gt.s32.totalorder %s43_s20, 0  ;;  %p178_p1 = scmp.lt.s32.totalorder %s43_s20, 511 }
  0x15   : > { %p52_p2 = scmp.gt.s32.totalorder %s51_s22, 0  ;;  %p183_p3 = scmp.lt.s32.totalorder %s51_s22, 511 }
  0x16   : > { %s392_s20 = smov (!%p44_p0, %s43_s20), 0  ;;  %p60_p4 = scmp.gt.s32.totalorder %s59_s24, 0 }
  0x17   : > { %s394_s22 = smov (!%p52_p2, %s51_s22), 0  ;;  %s396_s20 = smov (!%p178_p1, %s392_s20), 511 }
  0x18   : > { %s398_s22 = smov (!%p183_p3, %s394_s22), 511  ;;  %p188_p5 = scmp.lt.s32.totalorder %s59_s24, 511 }
  0x19   : > { %s400_s24 = smov (!%p60_p4, %s59_s24), 0  ;;  %p68_p6 = scmp.gt.s32.totalorder %s67_s26, 0 }
  0x1a   : > { %p193_p7 = scmp.lt.s32.totalorder %s67_s26, 511  ;;  %s402_s24 = smov (!%p188_p5, %s400_s24), 511 }
  0x1b   : > { %s404_s26 = smov (!%p68_p6, %s67_s26), 0  ;;  %p76_p8 = scmp.gt.s32.totalorder %s363_s28, 0 }
  0x1c   : > { %s56_s4 = scalar_lea.vmem [#allocation4], %s398_s22  ;;  %s406_s26 = smov (!%p193_p7, %s404_s26), 511 }
  0x1d   : > { %v57_v0 = vld [vmem:[%s56_s4] sm:$0x1]  ;;  %s77_s5 = scalar_select %p76_p8, %s363_s28, 0 }
  0x1e   : > { %p198_p9 = scmp.lt.s32.totalorder %s363_s28, 511  ;;  %s64_s6 = scalar_lea.vmem [#allocation4], %s402_s24  ;;  %v107_v2 = vrot.slane %v57_v0, 7 }
  0x1f   : > { %v65_v1 = vld [vmem:[%s64_s6] sm:$0x1]  ;;  %p84_p10 = scmp.gt.s32.totalorder %s366_s30, 0  ;;  %p203_p11 = scmp.lt.s32.totalorder %s366_s30, 511 }
  0x20   : > { %s48_s7 = scalar_lea.vmem [#allocation4], %s396_s20  ;;  %s408_s5 = smov (!%p198_p9, %s77_s5), 511  ;;  %v110_v5 = vrot.slane %v65_v1, 6 }
  0x21   : > { %v49_v3 = vld [vmem:[%s48_s7] sm:$0x1]  ;;  %s410_s30 = smov (!%p84_p10, %s366_s30), 0  ;;  %s72_s8 = scalar_lea.vmem [#allocation4], %s406_s26 }
  0x22   : > { %v73_v4 = vld [vmem:[%s72_s8] sm:$0x1]  ;;  %s91_s9 = sld [smem:[#allocation3 + %s90_s3]]  ;;  %s412_s30 = smov (!%p203_p11, %s410_s30), 511  ;;  %v128_v6 = vsel %vm127_vm0, %v49_v3, %v107_v2 }
  0x23   : > { %s98_s10 = sadd.s32 7, %s356_s1  ;;  %s80_s11 = scalar_lea.vmem [#allocation4], %s408_s5  ;;  %v113_v8 = vrot.slane %v73_v4, 5  ;;  %v130_v9 = vsel %vm129_vm1, %v128_v6, %v110_v5 }
  0x24   : > { %v81_v7 = vld [vmem:[%s80_s11] sm:$0x1]  ;;  %s99_s12 = sld [smem:[#allocation3 + %s98_s10]]  ;;  %s88_s13 = scalar_lea.vmem [#allocation4], %s412_s30 }
  0x25   : > { %v89_v10 = vld [vmem:[%s88_s13] sm:$0x1]  ;;  %v116_v11 = vrot.slane %v81_v7, 4  ;;  %v132_v12 = vsel %vm131_vm2, %v130_v9, %v113_v8  ;;  %s141_s16 = scalar_lea.vmem [#allocation7], %s356_s1  ;;  %p37_p2 = scmp.ge.s32.totalorder %s40_s0, 2  }
  0x26   : > { %v119_v13 = vrot.slane %v89_v10, 3  ;;  %s149_s21 = sshll.u32 (%p37_p2), %s390_s2, 4  ;;  %s325_s22 = smov (%p37_p2), [#allocation7]   ;;  %s150_s21 = int_to_ptr.hbm [resolvable:$true] %s149_s21 }
  0x27   : > { %v134_v14 = vsel %vm133_vm3, %v132_v12, %v116_v11  ;;  %s147_s23 = sshll.u32 (%p37_p2), %s325_s22, 4  ;;  %s148_s23 = int_to_ptr.vmem [resolvable:$true] %s147_s23 }
  0x28   : > { %p92_p12 = scmp.gt.s32.totalorder %s91_s9, 0  ;;  %p208_p13 = scmp.lt.s32.totalorder %s91_s9, 511  ;;  %v136_v16 = vsel %vm135_vm4, %v134_v14, %v119_v13 }
  0x2a   : > { %s414_s9 = smov (!%p92_p12, %s91_s9), 0  ;;  %p100_p0 = scmp.gt.s32.totalorder %s99_s12, 0 }
  0x2b   : > { %p213_p1 = scmp.lt.s32.totalorder %s99_s12, 511  ;;  %s416_s9 = smov (!%p208_p13, %s414_s9), 511 }
  0x2c   : > { %s418_s12 = smov (!%p100_p0, %s99_s12), 0  ;;  %s96_s14 = scalar_lea.vmem [#allocation4], %s416_s9 }
  0x2d   : > { %v97_v15 = vld [vmem:[%s96_s14] sm:$0x1]  ;;  %s420_s12 = smov (!%p213_p1, %s418_s12), 511 }
  0x2e   : > { %v122_v17 = vrot.slane %v97_v15, 2  ;;  %s104_s15 = scalar_lea.vmem [#allocation4], %s420_s12 }
  0x2f   : > { %v105_v18 = vld [vmem:[%s104_s15] sm:$0x1]  ;;  %39 = sbr.rel (!%p37_p2) target bundleno = 13 (0xd), region = 44 }
  0x30   : > { %v138_v19 = vsel %vm137_vm5, %v136_v16, %v122_v17  ;;  %v125_v20 = vrot.slane %v105_v18, 1 }
  0x32   : > { %v140_v21 = vsel %vm139_vm6, %v138_v19, %v125_v20 }
  0x33   : > { %142 = vst [vmem:[%s141_s16] sm:$0xff] %v140_v21 }
  0x34   :  { %155 = dma.vmem_to_hbm [thread:$0]  %s148_s23, 256, %s150_s21, [#allocation6], %s323_s18, %s323_s18, %s324_s19  }
  0x35   :  { %315 = dma.done.wait [#allocation6], 256  }
  0x36   :  { %316 = vsyncadd [#allocation6], 4294967040 }
  0x37   :  { %160 = vsyncpa [#allocation5], 1 }
  0x38   :  { %161 = vsyncpa [#allocation6], 1 }

</bundles_post_ra>
